<compile_context>
chip_gen: v6e
topology: v6e:2x2x1
jax: 0.10.0
libtpu: 0.0.40
codegen_flags: <defaults>
</compile_context>

<pallas_src>
import functools

import jax
import jax.numpy as jnp
from jax.experimental import pallas as pl
from jax.experimental.pallas import tpu as pltpu

CPAD = 128  # class dim padded to one full lane width


def mlp_kernel(num_classes, x_ref, w1_ref, b1_ref, w2_ref, b2_ref,
               w3_ref, b3_ref, w4_ref, b4_ref, out_ref):
    # Activations cast to bf16 for the MXU; accumulation stays f32.
    x = x_ref[...].astype(jnp.bfloat16)                               # [TB, Din]

    # fc1 + ReLU  (dropout = identity in eval)
    h = jnp.dot(x, w1_ref[...], preferred_element_type=jnp.float32) + b1_ref[...]
    h = jnp.maximum(h, 0.0)                                           # [TB, 128]

    # fc2 (no activation between fc2/fc3/fc4 in the reference forward)
    h = jnp.dot(h.astype(jnp.bfloat16), w2_ref[...],
                preferred_element_type=jnp.float32) + b2_ref[...]     # [TB, 256]

    # fc3
    h = jnp.dot(h.astype(jnp.bfloat16), w3_ref[...],
                preferred_element_type=jnp.float32) + b3_ref[...]     # [TB, 128]

    # fc4 -> logits (class dim padded to 128 lanes)
    logits = jnp.dot(h.astype(jnp.bfloat16), w4_ref[...],
                     preferred_element_type=jnp.float32) + b4_ref[...]  # [TB, CPAD]

    # Mask padded class lanes so they never influence the softmax normalizer.
    col = jax.lax.broadcasted_iota(jnp.int32, logits.shape, 1)
    neg_big = jnp.float32(-1e30)
    logits = jnp.where(col < num_classes, logits, neg_big)

    # log_softmax over the class dimension.
    m = jnp.max(logits, axis=-1, keepdims=True)
    shifted = logits - m
    lse = jnp.log(jnp.sum(jnp.exp(shifted), axis=-1, keepdims=True))
    out_ref[...] = shifted - lse


def prepare_params(params, num_classes):
    """One-time prep: pad fc4 to 128 output lanes, cast weights to bf16.

    Biases stay f32 (tiny; added post-accumulation).
    """
    w1, b1, w2, b2, w3, b3, w4, b4 = params
    w4p = jnp.zeros((w4.shape[0], CPAD), jnp.float32).at[:, :num_classes].set(w4)
    b4p = jnp.zeros((1, CPAD), jnp.float32).at[:, :num_classes].set(b4)
    return (w1.astype(jnp.bfloat16), b1,
            w2.astype(jnp.bfloat16), b2,
            w3.astype(jnp.bfloat16), b3,
            w4p.astype(jnp.bfloat16), b4p)


@functools.partial(jax.jit, static_argnums=(2,))
def mlp_forward(x_nchw, prepared_params, num_classes):
    B = x_nchw.shape[0]
    x_flat = x_nchw.reshape(B, -1).astype(jnp.float32)                # [B, C*H*W]
    Din = x_flat.shape[1]

    # Batch tile: pad B up to a sublane multiple (8); tile at 256 for large B
    # (keeps the 256-wide MXU rows full on v6e/v7x).
    if B > 256:
        TB = 256
    else:
        TB = max(8, ((B + 7) // 8) * 8)
    Bpad = ((B + TB - 1) // TB) * TB
    if Bpad != B:
        x_flat = jnp.pad(x_flat, ((0, Bpad - B), (0, 0)))

    w1, b1, w2, b2, w3, b3, w4p, b4p = prepared_params
    operands = (x_flat, w1, b1, w2, b2, w3, b3, w4p, b4p)

    # Weights/biases: constant index_map -> fetched once, VMEM-resident.
    def resident(a):
        nd = a.ndim
        return pl.BlockSpec(a.shape, lambda i, _nd=nd: (0,) * _nd)

    in_specs = [pl.BlockSpec((TB, Din), lambda i: (i, 0))] + \
               [resident(a) for a in operands[1:]]

    # Advisory cost hint for XLA scheduling around the custom call.
    flops = 2 * Bpad * (Din * 128 + 128 * 256 + 256 * 128 + 128 * CPAD)
    bytes_accessed = (int(x_flat.size) * 4
                      + sum(int(a.size) * a.dtype.itemsize for a in operands[1:])
                      + Bpad * CPAD * 4)
    cost = pl.CostEstimate(flops=flops,
                           transcendentals=Bpad * (CPAD + 1),
                           bytes_accessed=bytes_accessed)

    out_padded = pl.pallas_call(
        functools.partial(mlp_kernel, num_classes),
        out_shape=jax.ShapeDtypeStruct((Bpad, CPAD), jnp.float32),
        grid_spec=pltpu.PrefetchScalarGridSpec(
            num_scalar_prefetch=0,
            grid=(Bpad // TB,),
            in_specs=in_specs,
            out_specs=pl.BlockSpec((TB, CPAD), lambda i: (i, 0)),
        ),
        compiler_params=pltpu.CompilerParams(
            dimension_semantics=("parallel",)),
        cost_estimate=cost,
    )(*operands)

    return out_padded[:B, :num_classes]                               # [B, num_classes]


def init_params(key, in_features, num_classes):
    """Deterministic PyTorch-style nn.Linear init: U(-1/sqrt(fan_in), 1/sqrt(fan_in))."""
    dims = [(in_features, 128), (128, 256), (256, 128), (128, num_classes)]
    params = []
    for (fan_in, fan_out) in dims:
        key, kw, kb = jax.random.split(key, 3)
        bound = 1.0 / float(fan_in) ** 0.5
        w = jax.random.uniform(kw, (fan_in, fan_out), jnp.float32, -bound, bound)
        b = jax.random.uniform(kb, (1, fan_out), jnp.float32, -bound, bound)
        params += [w, b]
    return tuple(params)


if __name__ == "__main__":
    # Small shapes consistent with the module: B=2, C=4, 16x16 images, 10 classes.
    B, C, H, W = 2, 4, 16, 16
    NUM_CLASSES = 10
    IN_FEATURES = C * H * W                      # image_size * channels = 256 * 4

    key = jax.random.PRNGKey(0)
    key, kx = jax.random.split(key)
    x = jax.random.normal(kx, (B, C, H, W), jnp.float32)             # NCHW like PyTorch

    params = init_params(key, IN_FEATURES, NUM_CLASSES)
    prepared = prepare_params(params, NUM_CLASSES)                   # one-time prep

    out = mlp_forward(x, prepared, NUM_CLASSES)
    jax.block_until_ready(out)

    # Sanity: log_softmax rows should sum to ~1 in prob space.
    row_sums = jnp.sum(jnp.exp(out), axis=1)
    assert out.shape == (B, NUM_CLASSES)
    assert bool(jnp.all(jnp.abs(row_sums - 1.0) < 1e-3))

    # Cross-check against a pure-JAX f32 reference (bf16 weights give ~1e-2 tol).
    w1, b1, w2, b2, w3, b3, w4, b4 = params
    xf = x.reshape(B, -1)
    hr = jnp.maximum(xf @ w1 + b1, 0.0)
    hr = hr @ w2 + b2
    hr = hr @ w3 + b3
    lr = hr @ w4 + b4
    ref = jax.nn.log_softmax(lr, axis=-1)
    assert bool(jnp.all(jnp.abs(out - ref) < 5e-2))

    print("KERNEL_OK")
</pallas_src>

<mosaic_0001>
module attributes {stable_mosaic.version = 11 : i64} {
  func.func @mlp_kernel(%arg0: i32, %arg1: memref<8x1024xf32, #tpu.memory_space<vmem>>, %arg2: memref<1024x128xbf16, #tpu.memory_space<vmem>>, %arg3: memref<1x128xf32, #tpu.memory_space<vmem>>, %arg4: memref<128x256xbf16, #tpu.memory_space<vmem>>, %arg5: memref<1x256xf32, #tpu.memory_space<vmem>>, %arg6: memref<256x128xbf16, #tpu.memory_space<vmem>>, %arg7: memref<1x128xf32, #tpu.memory_space<vmem>>, %arg8: memref<128x128xbf16, #tpu.memory_space<vmem>>, %arg9: memref<1x128xf32, #tpu.memory_space<vmem>>, %arg10: memref<8x128xf32, #tpu.memory_space<vmem>>) attributes {dimension_semantics = [#tpu.dimension_semantics<parallel>], iteration_bounds = array<i64: 1>, scalar_prefetch = 0 : i64, scratch_operands = 0 : i64, tpu.core_type = #tpu.core_type<tc>, window_params = [{transform_indices = @transform_0, window_bounds = array<i64: 8, 1024>}, {pipeline_mode = #tpu.pipeline_mode<synchronous>, transform_indices = @transform_1, window_bounds = array<i64: 1024, 128>}, {pipeline_mode = #tpu.pipeline_mode<synchronous>, transform_indices = @transform_2, window_bounds = array<i64: 1, 128>}, {pipeline_mode = #tpu.pipeline_mode<synchronous>, transform_indices = @transform_3, window_bounds = array<i64: 128, 256>}, {pipeline_mode = #tpu.pipeline_mode<synchronous>, transform_indices = @transform_4, window_bounds = array<i64: 1, 256>}, {pipeline_mode = #tpu.pipeline_mode<synchronous>, transform_indices = @transform_5, window_bounds = array<i64: 256, 128>}, {pipeline_mode = #tpu.pipeline_mode<synchronous>, transform_indices = @transform_6, window_bounds = array<i64: 1, 128>}, {pipeline_mode = #tpu.pipeline_mode<synchronous>, transform_indices = @transform_7, window_bounds = array<i64: 128, 128>}, {pipeline_mode = #tpu.pipeline_mode<synchronous>, transform_indices = @transform_8, window_bounds = array<i64: 1, 128>}, {transform_indices = @transform_9, window_bounds = array<i64: 8, 128>}]} {
    %c0 = arith.constant 0 : index
    %c0_0 = arith.constant 0 : index
    %0 = vector.load %arg1[%c0, %c0_0] : memref<8x1024xf32, #tpu.memory_space<vmem>>, vector<8x1024xf32>
    %1 = arith.truncf %0 : vector<8x1024xf32> to vector<8x1024xbf16>
    %c0_1 = arith.constant 0 : index
    %c0_2 = arith.constant 0 : index
    %2 = vector.load %arg2[%c0_1, %c0_2] : memref<1024x128xbf16, #tpu.memory_space<vmem>>, vector<1024x128xbf16>
    %cst = arith.constant dense<0.000000e+00> : vector<8x128xf32>
    %3 = tpu.matmul %1, %2, %cst {dimension_numbers = #tpu.dot_dimension_numbers<[1], [0], [0], [1], [0, 0, 1, 1], [], []>} : vector<8x1024xbf16>, vector<1024x128xbf16>, vector<8x128xf32> -> vector<8x128xf32>
    %c0_3 = arith.constant 0 : index
    %c0_4 = arith.constant 0 : index
    %4 = vector.load %arg3[%c0_3, %c0_4] : memref<1x128xf32, #tpu.memory_space<vmem>>, vector<1x128xf32>
    %5 = vector.broadcast %4 : vector<1x128xf32> to vector<8x128xf32>
    %6 = arith.addf %3, %5 : vector<8x128xf32>
    %cst_5 = arith.constant 0.000000e+00 : f32
    %7 = vector.broadcast %cst_5 : f32 to vector<8x128xf32>
    %8 = arith.maximumf %6, %7 : vector<8x128xf32>
    %9 = arith.truncf %8 : vector<8x128xf32> to vector<8x128xbf16>
    %c0_6 = arith.constant 0 : index
    %c0_7 = arith.constant 0 : index
    %10 = vector.load %arg4[%c0_6, %c0_7] : memref<128x256xbf16, #tpu.memory_space<vmem>>, vector<128x256xbf16>
    %cst_8 = arith.constant dense<0.000000e+00> : vector<8x256xf32>
    %11 = tpu.matmul %9, %10, %cst_8 {dimension_numbers = #tpu.dot_dimension_numbers<[1], [0], [0], [1], [0, 0, 1, 1], [], []>} : vector<8x128xbf16>, vector<128x256xbf16>, vector<8x256xf32> -> vector<8x256xf32>
    %c0_9 = arith.constant 0 : index
    %c0_10 = arith.constant 0 : index
    %12 = vector.load %arg5[%c0_9, %c0_10] : memref<1x256xf32, #tpu.memory_space<vmem>>, vector<1x256xf32>
    %13 = vector.broadcast %12 : vector<1x256xf32> to vector<8x256xf32>
    %14 = arith.addf %11, %13 : vector<8x256xf32>
    %15 = arith.truncf %14 : vector<8x256xf32> to vector<8x256xbf16>
    %c0_11 = arith.constant 0 : index
    %c0_12 = arith.constant 0 : index
    %16 = vector.load %arg6[%c0_11, %c0_12] : memref<256x128xbf16, #tpu.memory_space<vmem>>, vector<256x128xbf16>
    %cst_13 = arith.constant dense<0.000000e+00> : vector<8x128xf32>
    %17 = tpu.matmul %15, %16, %cst_13 {dimension_numbers = #tpu.dot_dimension_numbers<[1], [0], [0], [1], [0, 0, 1, 1], [], []>} : vector<8x256xbf16>, vector<256x128xbf16>, vector<8x128xf32> -> vector<8x128xf32>
    %c0_14 = arith.constant 0 : index
    %c0_15 = arith.constant 0 : index
    %18 = vector.load %arg7[%c0_14, %c0_15] : memref<1x128xf32, #tpu.memory_space<vmem>>, vector<1x128xf32>
    %19 = vector.broadcast %18 : vector<1x128xf32> to vector<8x128xf32>
    %20 = arith.addf %17, %19 : vector<8x128xf32>
    %21 = arith.truncf %20 : vector<8x128xf32> to vector<8x128xbf16>
    %c0_16 = arith.constant 0 : index
    %c0_17 = arith.constant 0 : index
    %22 = vector.load %arg8[%c0_16, %c0_17] : memref<128x128xbf16, #tpu.memory_space<vmem>>, vector<128x128xbf16>
    %cst_18 = arith.constant dense<0.000000e+00> : vector<8x128xf32>
    %23 = tpu.matmul %21, %22, %cst_18 {dimension_numbers = #tpu.dot_dimension_numbers<[1], [0], [0], [1], [0, 0, 1, 1], [], []>} : vector<8x128xbf16>, vector<128x128xbf16>, vector<8x128xf32> -> vector<8x128xf32>
    %c0_19 = arith.constant 0 : index
    %c0_20 = arith.constant 0 : index
    %24 = vector.load %arg9[%c0_19, %c0_20] : memref<1x128xf32, #tpu.memory_space<vmem>>, vector<1x128xf32>
    %25 = vector.broadcast %24 : vector<1x128xf32> to vector<8x128xf32>
    %26 = arith.addf %23, %25 : vector<8x128xf32>
    %27 = tpu.iota {dimensions = array<i32: 1>} : vector<8x128xi32>
    %c10_i32 = arith.constant 10 : i32
    %28 = vector.broadcast %c10_i32 : i32 to vector<8x128xi32>
    %29 = arith.cmpi slt, %27, %28 : vector<8x128xi32>
    %cst_21 = arith.constant -1.000000e+30 : f32
    %30 = vector.broadcast %cst_21 : f32 to vector<8x128xf32>
    %31 = arith.select %29, %26, %30 : vector<8x128xi1>, vector<8x128xf32>
    %cst_22 = arith.constant dense<0xFF800000> : vector<8xf32>
    %32 = vector.multi_reduction <maximumf>, %31, %cst_22 [1] : vector<8x128xf32> to vector<8xf32>
    %33 = vector.shape_cast %32 : vector<8xf32> to vector<8x1xf32>
    %34 = vector.broadcast %33 : vector<8x1xf32> to vector<8x128xf32>
    %35 = arith.subf %31, %34 : vector<8x128xf32>
    %36 = math.exp %35 : vector<8x128xf32>
    %cst_23 = arith.constant dense<0.000000e+00> : vector<8xf32>
    %37 = vector.multi_reduction <add>, %36, %cst_23 [1] : vector<8x128xf32> to vector<8xf32>
    %38 = vector.shape_cast %37 : vector<8xf32> to vector<8x1xf32>
    %39 = math.log %38 : vector<8x1xf32>
    %40 = vector.broadcast %39 : vector<8x1xf32> to vector<8x128xf32>
    %41 = arith.subf %35, %40 : vector<8x128xf32>
    %c0_24 = arith.constant 0 : index
    %c0_25 = arith.constant 0 : index
    %42 = vector.load %arg10[%c0_24, %c0_25] : memref<8x128xf32, #tpu.memory_space<vmem>>, vector<8x128xf32>
    tpu.vector_store %arg10[%c0_24, %c0_25], %41 {strides = array<i32>} : memref<8x128xf32, #tpu.memory_space<vmem>>, vector<8x128xf32>,
    return
  }
  func.func @transform_0(%arg0: i32) -> (i32, i32) {
    %c0_i32 = arith.constant 0 : i32
    %c0_i32_0 = arith.constant 0 : i32
    return %arg0, %c0_i32 : i32, i32
  }
  func.func @transform_1(%arg0: i32) -> (i32, i32) {
    %c0_i32 = arith.constant 0 : i32
    %c0_i32_0 = arith.constant 0 : i32
    %c0_i32_1 = arith.constant 0 : i32
    return %c0_i32, %c0_i32_0 : i32, i32
  }
  func.func @transform_2(%arg0: i32) -> (i32, i32) {
    %c0_i32 = arith.constant 0 : i32
    %c0_i32_0 = arith.constant 0 : i32
    %c0_i32_1 = arith.constant 0 : i32
    return %c0_i32, %c0_i32_0 : i32, i32
  }
  func.func @transform_3(%arg0: i32) -> (i32, i32) {
    %c0_i32 = arith.constant 0 : i32
    %c0_i32_0 = arith.constant 0 : i32
    %c0_i32_1 = arith.constant 0 : i32
    return %c0_i32, %c0_i32_0 : i32, i32
  }
  func.func @transform_4(%arg0: i32) -> (i32, i32) {
    %c0_i32 = arith.constant 0 : i32
    %c0_i32_0 = arith.constant 0 : i32
    %c0_i32_1 = arith.constant 0 : i32
    return %c0_i32, %c0_i32_0 : i32, i32
  }
  func.func @transform_5(%arg0: i32) -> (i32, i32) {
    %c0_i32 = arith.constant 0 : i32
    %c0_i32_0 = arith.constant 0 : i32
    %c0_i32_1 = arith.constant 0 : i32
    return %c0_i32, %c0_i32_0 : i32, i32
  }
  func.func @transform_6(%arg0: i32) -> (i32, i32) {
    %c0_i32 = arith.constant 0 : i32
    %c0_i32_0 = arith.constant 0 : i32
    %c0_i32_1 = arith.constant 0 : i32
    return %c0_i32, %c0_i32_0 : i32, i32
  }
  func.func @transform_7(%arg0: i32) -> (i32, i32) {
    %c0_i32 = arith.constant 0 : i32
    %c0_i32_0 = arith.constant 0 : i32
    %c0_i32_1 = arith.constant 0 : i32
    return %c0_i32, %c0_i32_0 : i32, i32
  }
  func.func @transform_8(%arg0: i32) -> (i32, i32) {
    %c0_i32 = arith.constant 0 : i32
    %c0_i32_0 = arith.constant 0 : i32
    %c0_i32_1 = arith.constant 0 : i32
    return %c0_i32, %c0_i32_0 : i32, i32
  }
  func.func @transform_9(%arg0: i32) -> (i32, i32) {
    %c0_i32 = arith.constant 0 : i32
    %c0_i32_0 = arith.constant 0 : i32
    return %arg0, %c0_i32 : i32, i32
  }
}

</mosaic_0001>

<bundles_post_ra>
// kernel: mlp_forward.1
= control target key start
LH: loop header
LB: loop body
LE: loop exit
PB: predicated region body
PF: predicated region fallthrough
CT: control target
= control target key end

     0   :  { %14 = vsyncpa [#allocation3], 0  ;;  %s1804_s0 = inlined_call_operand.vmem [shape: f32[8,1024], index: 0, kind: input, shape index: {}]   ;;  %s1805_s1 = inlined_call_operand.hbm [shape: bf16[1024,128], index: 1, kind: input, shape index: {}]   ;;  %s1806_s2 = inlined_call_operand.vmem [shape: f32[1,128], index: 2, kind: input, shape index: {}]   ;;  %s1807_s3 = inlined_call_operand.vmem [shape: bf16[128,256], index: 3, kind: input, shape index: {}]   ;;  %s1808_s4 = inlined_call_operand.vmem [shape: f32[1,256], index: 4, kind: input, shape index: {}]   ;;  %s1809_s5 = inlined_call_operand.hbm [shape: bf16[256,128], index: 5, kind: input, shape index: {}]   ;;  %s1810_s6 = inlined_call_operand.vmem [shape: f32[1,128], index: 6, kind: input, shape index: {}]   ;;  %s1811_s7 = inlined_call_operand.vmem [shape: bf16[128,128], index: 7, kind: input, shape index: {}]   ;;  %s1812_s8 = inlined_call_operand.vmem [shape: f32[1,128], index: 8, kind: input, shape index: {}]   ;;  %s1813_s9 = inlined_call_operand.vmem [shape: f32[8,128], index: 9, kind: output, shape index: {}]  }
   0x1   :  { %15 = vsyncpa [#allocation5], 0  ;;  %s1630_s30 = smov [#allocation2]  }
   0x2   :  { %s23_s10 = sshll.u32 %s1630_s30, 4  ;;  %s24_s10 = int_to_ptr.vmem [resolvable:$true] %s23_s10 }
   0x3   :  { %s1594_s11 = scalar_lea.vmem %s24_s10, 8192  ;;  %p1599_p1 = scmp.lt.s32.totalorder %s24_s10, %s24_s10 }
   0x4   :  { %p1595_p0 = scmp.ne.s32.totalorder %s24_s10, %s1594_s11  ;;  %p1600_p2 = scmp.lt.s32.totalorder %s1594_s11, %s1594_s11 }
   0x6   :  { %p1601_p3 = por %p1600_p2, %p1599_p1 }
   0x8   :  { %p1602_p4 = pnand %p1601_p3, %p1595_p0 }
   0xa   :  { %1605 = shalt.err (!%p1602_p4)
}
   0xb   :  { %s1631_s12 = smov 64   ;;  %s1632_s13 = smov 4  }
   0xc   :  { %29 = dma.hbm_to_vmem [thread:$0]  %s1805_s1, 8192, %s24_s10, [#allocation3], %s1631_s12, %s1631_s12, %s1632_s13  }
   0xd   :  { %s1633_s16 = smov [#allocation4]  }
   0xe   :  { %s41_s17 = sshll.u32 %s1633_s16, 4  ;;  %s42_s17 = int_to_ptr.vmem [resolvable:$true] %s41_s17 }
   0xf   :  { %s1614_s18 = scalar_lea.vmem %s42_s17, 2048  ;;  %p1619_p6 = scmp.lt.s32.totalorder %s42_s17, %s42_s17 }
  0x10   :  { %p1615_p5 = scmp.ne.s32.totalorder %s42_s17, %s1614_s18  ;;  %p1620_p7 = scmp.lt.s32.totalorder %s1614_s18, %s1614_s18 }
  0x12   :  { %p1621_p8 = por %p1620_p7, %p1619_p6 }
  0x14   :  { %p1622_p9 = pnand %p1621_p8, %p1615_p5 }
  0x16   :  { %1625 = shalt.err (!%p1622_p9)
}
  0x17   :  { %47 = dma.hbm_to_vmem [thread:$0]  %s1809_s5, 2048, %s42_s17, [#allocation5], %s1631_s12, %s1631_s12, %s1632_s13  }
  0x18   :  { %1626 = dma.done.wait [#allocation3], 8192  }
  0x19   :  { %1627 = vsyncadd [#allocation3], 4294959104 }
  0x1a   :  { %1628 = dma.done.wait [#allocation5], 2048  }
  0x1b   :  { %1629 = vsyncadd [#allocation5], 4294965248  ;;  %v1470_v0 = vld [vmem:[#allocation2 + $0x78] sm:$0xff]   ;;  %v1474_v4 = vld [vmem:[#allocation2 + $0x70] sm:$0xff]   ;;  %vm1636_vm0 = vmmov 0  }
  0x1c   :  { %v1471_v1 = vld [vmem:[#allocation2 + $0xf8] sm:$0xff]   ;;  %1324 = vmatprep.subr.bf16.mxu0 %v1470_v0  ;;  %v1475_v5 = vld [vmem:[#allocation2 + $0xf0] sm:$0xff]   ;;  %v1478_v8 = vld [vmem:[#allocation2 + $0x68] sm:$0xff]  }
  0x1d   :  { %v1472_v2 = vld [vmem:[#allocation2 + $0x38] sm:$0xff]   ;;  %1346 = vmatprep.subr.bf16.mxu1 %v1471_v1  ;;  %v1476_v6 = vld [vmem:[#allocation2 + $0x30] sm:$0xff]   ;;  %v1479_v9 = vld [vmem:[#allocation2 + $0xe8] sm:$0xff]  }
  0x1e   :  { %v1473_v3 = vld [vmem:[#allocation2 + $0xb8] sm:$0xff]   ;;  %1325 = vmatpush3.bf16.msra.mxu0 %v1472_v2  ;;  %v1477_v7 = vld [vmem:[#allocation2 + $0xb0] sm:$0xff]   ;;  %v1480_v10 = vld [vmem:[#allocation2 + $0x28] sm:$0xff]  }
  0x1f   :  { %1347 = vmatpush3.bf16.msra.mxu1 %v1473_v3  ;;  %1326 = vmatprep.subr.bf16.mxu0 %v1474_v4  ;;  %v1481_v11 = vld [vmem:[#allocation2 + $0xa8] sm:$0xff]   ;;  %v1482_v12 = vld [vmem:[#allocation2 + $0x60] sm:$0xff]   ;;  %v1486_v16 = vld [vmem:[#allocation2 + $0x58] sm:$0xff]  }
  0x20   :  { %1348 = vmatprep.subr.bf16.mxu1 %v1475_v5  ;;  %v1483_v13 = vld [vmem:[#allocation2 + $0xe0] sm:$0xff]   ;;  %v1487_v17 = vld [vmem:[#allocation2 + $0xd8] sm:$0xff]   ;;  %v1490_v20 = vld [vmem:[#allocation2 + $0x50] sm:$0xff]  }
  0x21   :  { %v1484_v14 = vld [vmem:[#allocation2 + $0x20] sm:$0xff]   ;;  %v1488_v18 = vld [vmem:[#allocation2 + $0x18] sm:$0xff]   ;;  %v1491_v21 = vld [vmem:[#allocation2 + $0xd0] sm:$0xff]  }
  0x22   :  { %1327 = vmatpush3.bf16.msra.mxu0 %v1476_v6  ;;  %v1485_v15 = vld [vmem:[#allocation2 + $0xa0] sm:$0xff]   ;;  %v1489_v19 = vld [vmem:[#allocation2 + $0x98] sm:$0xff]   ;;  %v1492_v22 = vld [vmem:[#allocation2 + $0x10] sm:$0xff]  }
  0x23   :  { %1349 = vmatpush3.bf16.msra.mxu1 %v1477_v7  ;;  %1328 = vmatprep.subr.bf16.mxu0 %v1478_v8  ;;  %v1493_v23 = vld [vmem:[#allocation2 + $0x90] sm:$0xff]   ;;  %v1494_v24 = vld [vmem:[#allocation2 + $0x48] sm:$0xff]   ;;  %v1498_v28 = vld [vmem:[#allocation2 + $0x40] sm:$0xff]  }
  0x24   :  { %1350 = vmatprep.subr.bf16.mxu1 %v1479_v9  ;;  %v1495_v25 = vld [vmem:[#allocation2 + $0xc8] sm:$0xff]   ;;  %v1499_v29 = vld [vmem:[#allocation2 + $0xc0] sm:$0xff]   ;;  %v64_v33 = vld [vmem:[%s1804_s0 + $0x18] sm:$0xff] }
  0x25   :  { %v1496_v26 = vld [vmem:[#allocation2 + $0x8] sm:$0xff]   ;;  %v1500_v30 = vld [vmem:[#allocation2] sm:$0xff]   ;;  %v72_v36 = vpack.c.bf16 %v64_v33, %v64_v33  ;;  %v63_v38 = vld [vmem:[%s1804_s0 + $0x10] sm:$0xff] }
  0x26   :  { %1329 = vmatpush3.bf16.msra.mxu0 %v1480_v10  ;;  %v1497_v27 = vld [vmem:[#allocation2 + $0x88] sm:$0xff]   ;;  %v1501_v31 = vld [vmem:[#allocation2 + $0x80] sm:$0xff]   ;;  %v71_v39 = vpack.c.bf16 %v63_v38, %v63_v38  ;;  %v1502_v40 = vld [vmem:[#allocation2 + $0x178] sm:$0xff]  }
  0x27   :  { %1351 = vmatpush3.bf16.msra.mxu1 %v1481_v11  ;;  %1330 = vmatprep.subr.bf16.mxu0 %v1482_v12  ;;  %v62_v32 = vld [vmem:[%s1804_s0 + $0x8] sm:$0xff]  ;;  %v61_v34 = vld [vmem:[%s1804_s0] sm:$0xff]  ;;  %v1503_v41 = vld [vmem:[#allocation2 + $0x1f8] sm:$0xff]  }
  0x28   :  { %1352 = vmatprep.subr.bf16.mxu1 %v1483_v13  ;;  %v70_v35 = vpack.c.bf16 %v62_v32, %v62_v32  ;;  %v69_v37 = vpack.c.bf16 %v61_v34, %v61_v34  ;;  %668 = vmatprep.mubr.bf16.mxu1 %v72_v36  ;;  %v1504_v42 = vld [vmem:[#allocation2 + $0x138] sm:$0xff]   ;;  %v1506_v44 = vld [vmem:[#allocation2 + $0x170] sm:$0xff]   ;;  %v1510_v48 = vld [vmem:[#allocation2 + $0x168] sm:$0xff]   ;;  %v1634_v32 = vmov 0  }
  0x29   :  { %v1505_v43 = vld [vmem:[#allocation2 + $0x1b8] sm:$0xff]   ;;  %v1507_v45 = vld [vmem:[#allocation2 + $0x1f0] sm:$0xff]   ;;  %v1511_v49 = vld [vmem:[#allocation2 + $0x1e8] sm:$0xff]  }
  0x2a   :  { %1331 = vmatpush3.bf16.msra.mxu0 %v1484_v14  ;;  %628 = vmatprep.mubr.bf16.mxu0 %v70_v35  ;;  %v1508_v46 = vld [vmem:[#allocation2 + $0x130] sm:$0xff]   ;;  %v1512_v50 = vld [vmem:[#allocation2 + $0x128] sm:$0xff]   ;;  %v1514_v52 = vld [vmem:[#allocation2 + $0x160] sm:$0xff]  }
  0x2b   :  { %1353 = vmatpush3.bf16.msra.mxu1 %v1485_v15  ;;  %1332 = vmatprep.subr.bf16.mxu0 %v1486_v16  ;;  %v1509_v47 = vld [vmem:[#allocation2 + $0x1b0] sm:$0xff]   ;;  %v1513_v51 = vld [vmem:[#allocation2 + $0x1a8] sm:$0xff]   ;;  %v1515_v53 = vld [vmem:[#allocation2 + $0x1e0] sm:$0xff]  }
  0x2c   :  { %1354 = vmatprep.subr.bf16.mxu1 %v1487_v17  ;;  %v1516_v54 = vld [vmem:[#allocation2 + $0x120] sm:$0xff]   ;;  %v1518_v56 = vld [vmem:[#allocation2 + $0x158] sm:$0xff]   ;;  %v1522_v60 = vld [vmem:[#allocation2 + $0x150] sm:$0xff]  }
  0x2d   :  { %v1517_v55 = vld [vmem:[#allocation2 + $0x1a0] sm:$0xff]   ;;  %v1519_v57 = vld [vmem:[#allocation2 + $0x1d8] sm:$0xff]   ;;  %v1523_v61 = vld [vmem:[#allocation2 + $0x1d0] sm:$0xff]  }
  0x2e   :  { %1333 = vmatpush3.bf16.msra.mxu0 %v1488_v18  ;;  %v1520_v58 = vld [vmem:[#allocation2 + $0x118] sm:$0xff]   ;;  %v1524_v62 = vld [vmem:[#allocation2 + $0x110] sm:$0xff]   ;;  %v1526_v0 = vld [vmem:[#allocation2 + $0x148] sm:$0xff]  }
  0x2f   :  { %1355 = vmatpush3.bf16.msra.mxu1 %v1489_v19  ;;  %1334 = vmatprep.subr.bf16.mxu0 %v1490_v20  ;;  %v1521_v59 = vld [vmem:[#allocation2 + $0x198] sm:$0xff]   ;;  %v1525_v63 = vld [vmem:[#allocation2 + $0x190] sm:$0xff]   ;;  %v1527_v1 = vld [vmem:[#allocation2 + $0x1c8] sm:$0xff]  }
  0x30   :  { %1356 = vmatprep.subr.bf16.mxu1 %v1491_v21  ;;  %v1528_v2 = vld [vmem:[#allocation2 + $0x108] sm:$0xff]   ;;  %v1530_v4 = vld [vmem:[#allocation2 + $0x140] sm:$0xff]   ;;  %v68_v9 = vld [vmem:[%s1804_s0 + $0x38] sm:$0xff] }
  0x31   :  { %v1529_v3 = vld [vmem:[#allocation2 + $0x188] sm:$0xff]   ;;  %v1531_v5 = vld [vmem:[#allocation2 + $0x1c0] sm:$0xff]   ;;  %v76_v11 = vpack.c.bf16 %v68_v9, %v68_v9  ;;  %v67_v13 = vld [vmem:[%s1804_s0 + $0x30] sm:$0xff] }
  0x32   :  { %1335 = vmatpush3.bf16.msra.mxu0 %v1492_v22  ;;  %v1532_v6 = vld [vmem:[#allocation2 + $0x100] sm:$0xff]   ;;  %v66_v8 = vld [vmem:[%s1804_s0 + $0x28] sm:$0xff]  ;;  %v75_v15 = vpack.c.bf16 %v67_v13, %v67_v13  ;;  %v1534_v16 = vld [vmem:[%s1807_s3 + $0x70] ss:$8 sps:$4 sm:$0xff]   ;;  %v1635_v13 = vmov 0.0  }
  0x33   :  { %1357 = vmatpush3.bf16.msra.mxu1 %v1493_v23  ;;  %1336 = vmatprep.subr.bf16.mxu0 %v1494_v24  ;;  %v1533_v7 = vld [vmem:[#allocation2 + $0x180] sm:$0xff]   ;;  %v74_v10 = vpack.c.bf16 %v66_v8, %v66_v8  ;;  %v1536_v17 = vld [vmem:[%s1807_s3 + $0x74] ss:$8 sps:$4 sm:$0xff]   ;;  %v1540_v21 = vld [vmem:[%s1807_s3 + $0x50] ss:$8 sps:$4 sm:$0xff]  }
  0x34   :  { %1358 = vmatprep.subr.bf16.mxu1 %v1495_v25  ;;  %v65_v12 = vld [vmem:[%s1804_s0 + $0x20] sm:$0xff]  ;;  %v1542_v20 = vld [vmem:[%s1807_s3 + $0x54] ss:$8 sps:$4 sm:$0xff]   ;;  %v1546_v25 = vld [vmem:[%s1807_s3 + $0x30] ss:$8 sps:$4 sm:$0xff]  }
  0x35   :  { %v73_v14 = vpack.c.bf16 %v65_v12, %v65_v12  ;;  %v1539_v18 = vld [vmem:[%s1807_s3 + $0x64] ss:$8 sps:$4 sm:$0xff]   ;;  %v1537_v19 = vld [vmem:[%s1807_s3 + $0x60] ss:$8 sps:$4 sm:$0xff]   ;;  %v1548_v24 = vld [vmem:[%s1807_s3 + $0x34] ss:$8 sps:$4 sm:$0xff]  }
  0x36   :  { %1337 = vmatpush3.bf16.msra.mxu0 %v1496_v26  ;;  %v1545_v22 = vld [vmem:[%s1807_s3 + $0x44] ss:$8 sps:$4 sm:$0xff]   ;;  %v1543_v23 = vld [vmem:[%s1807_s3 + $0x40] ss:$8 sps:$4 sm:$0xff]   ;;  %v1558_v33 = vld [vmem:[#allocation4 + $0x78] sm:$0xff]  }
  0x37   :  { %1359 = vmatpush3.bf16.msra.mxu1 %v1497_v27  ;;  %1338 = vmatprep.subr.bf16.mxu0 %v1498_v28  ;;  %v1551_v26 = vld [vmem:[%s1807_s3 + $0x24] ss:$8 sps:$4 sm:$0xff]   ;;  %v1549_v27 = vld [vmem:[%s1807_s3 + $0x20] ss:$8 sps:$4 sm:$0xff]   ;;  %v1554_v28 = vld [vmem:[%s1807_s3 + $0x14] ss:$8 sps:$4 sm:$0xff]  }
  0x38   :  { %1360 = vmatprep.subr.bf16.mxu1 %v1499_v29  ;;  %v1552_v29 = vld [vmem:[%s1807_s3 + $0x10] ss:$8 sps:$4 sm:$0xff]   ;;  %v1563_v38 = vld [vmem:[#allocation4 + $0x28] sm:$0xff]  }
  0x39   :  { %v1559_v34 = vld [vmem:[#allocation4 + $0x38] sm:$0xff]   ;;  %v1560_v35 = vld [vmem:[#allocation4 + $0x70] sm:$0xff]   ;;  %v1570_v8 = vld [vmem:[#allocation4 + $0x48] sm:$0xff]  }
  0x3a   :  { %1339 = vmatpush3.bf16.msra.mxu0 %v1500_v30  ;;  %v1557_v30 = vld [vmem:[%s1807_s3 + $0x4] ss:$8 sps:$4 sm:$0xff]   ;;  %v1561_v36 = vld [vmem:[#allocation4 + $0x30] sm:$0xff]   ;;  %v1574_v12 = vld [vmem:[%s1811_s7 + $0x38] sm:$0xff]  }
  0x3b   :  { %1361 = vmatpush3.bf16.msra.mxu1 %v1501_v31  ;;  %1368 = vmatprep.subr.bf16.mxu0 %v1502_v40  ;;  %v1555_v31 = vld [vmem:[%s1807_s3] ss:$8 sps:$4 sm:$0xff]  }
  0x3c   :  { %1390 = vmatprep.subr.bf16.mxu1 %v1503_v41  ;;  %v1565_v40 = vld [vmem:[#allocation4 + $0x20] sm:$0xff]   ;;  %v1566_v41 = vld [vmem:[#allocation4 + $0x58] sm:$0xff]   ;;  %v1571_v9 = vld [vmem:[#allocation4 + $0x8] sm:$0xff]  }
  0x3d   :  { %629 = vmatmul.mubr.bf16.vlgmr.msra.gmra.mxu0 %v69_v37  ;;  %v1562_v37 = vld [vmem:[#allocation4 + $0x68] sm:$0xff]  }
  0x3e   :  { %669 = vmatmul.mubr.bf16.vlgmr.msra.gmra.mxu1 %v71_v39  ;;  %1369 = vmatpush3.bf16.msra.mxu0 %v1504_v42  ;;  %v1564_v39 = vld [vmem:[#allocation4 + $0x60] sm:$0xff]   ;;  %v1567_v42 = vld [vmem:[#allocation4 + $0x18] sm:$0xff]  }
  0x3f   :  { %1391 = vmatpush3.bf16.msra.mxu1 %v1505_v43  ;;  %1370 = vmatprep.subr.bf16.mxu0 %v1506_v44  ;;  %v1568_v43 = vld [vmem:[#allocation4 + $0x50] sm:$0xff]  }
  0x40   :  { %1392 = vmatprep.subr.bf16.mxu1 %v1507_v45  ;;  %708 = vmatprep.mubr.bf16.mxu0 %v74_v10  ;;  %v1569_v44 = vld [vmem:[#allocation4 + $0x10] sm:$0xff]   ;;  %v1572_v10 = vld [vmem:[#allocation4 + $0x40] sm:$0xff]  }
  0x41   :  { %748 = vmatprep.mubr.bf16.mxu1 %v76_v11  ;;  %v1573_v11 = vld [vmem:[#allocation4] sm:$0xff]  }
  0x42   :  { %1371 = vmatpush3.bf16.msra.mxu0 %v1508_v46 }
  0x43   :  { %1393 = vmatpush3.bf16.msra.mxu1 %v1509_v47  ;;  %1372 = vmatprep.subr.bf16.mxu0 %v1510_v48 }
  0x44   :  { %1394 = vmatprep.subr.bf16.mxu1 %v1511_v49 }
  0x46   :  { %1373 = vmatpush3.bf16.msra.mxu0 %v1512_v50 }
  0x47   :  { %1395 = vmatpush3.bf16.msra.mxu1 %v1513_v51  ;;  %1374 = vmatprep.subr.bf16.mxu0 %v1514_v52 }
  0x48   :  { %1396 = vmatprep.subr.bf16.mxu1 %v1515_v53 }
  0x4a   :  { %1375 = vmatpush3.bf16.msra.mxu0 %v1516_v54  ;;  %v1217_v54 = vld [vmem:[%s1806_s2] ss:$0 sm:$0xff] }
  0x4b   :  { %1397 = vmatpush3.bf16.msra.mxu1 %v1517_v55  ;;  %1376 = vmatprep.subr.bf16.mxu0 %v1518_v56 }
  0x4c   :  { %1398 = vmatprep.subr.bf16.mxu1 %v1519_v57 }
  0x4e   :  { %1377 = vmatpush3.bf16.msra.mxu0 %v1520_v58 }
  0x4f   :  { %1399 = vmatpush3.bf16.msra.mxu1 %v1521_v59  ;;  %1378 = vmatprep.subr.bf16.mxu0 %v1522_v60 }
  0x50   :  { %1400 = vmatprep.subr.bf16.mxu1 %v1523_v61 }
  0x52   :  { %1379 = vmatpush3.bf16.msra.mxu0 %v1524_v62 }
  0x53   :  { %1401 = vmatpush3.bf16.msra.mxu1 %v1525_v63  ;;  %1380 = vmatprep.subr.bf16.mxu0 %v1526_v0 }
  0x54   :  { %1402 = vmatprep.subr.bf16.mxu1 %v1527_v1 }
  0x56   :  { %1381 = vmatpush3.bf16.msra.mxu0 %v1528_v2 }
  0x57   :  { %1403 = vmatpush3.bf16.msra.mxu1 %v1529_v3  ;;  %1382 = vmatprep.subr.bf16.mxu0 %v1530_v4 }
  0x58   :  { %1404 = vmatprep.subr.bf16.mxu1 %v1531_v5 }
  0x5a   :  { %1383 = vmatpush3.bf16.msra.mxu0 %v1532_v6 }
  0x5b   :  { %1405 = vmatpush3.bf16.msra.mxu1 %v1533_v7  ;;  %866 = vmatprep.subr.bf16.mxu0 %v1536_v17  ;;  %v1578_v17 = vld [vmem:[%s1811_s7 + $0x18] sm:$0xff]  }
  0x5c   :  { %1412 = vmatprep.subr.bf16.mxu1 %v1558_v33 }
  0x5d   :  { %709 = vmatmul.mubr.bf16.vlgmr.msra.gmra.mxu0 %v73_v14  ;;  %v1575_v14 = vld [vmem:[%s1811_s7 + $0x30] sm:$0xff]  }
  0x5e   :  { %749 = vmatmul.mubr.bf16.vlgmr.msra.gmra.mxu1 %v75_v15  ;;  %867 = vmatpush1.bf16.msra.mxu0 %v1534_v16  ;;  %v1576_v15 = vld [vmem:[%s1811_s7 + $0x28] sm:$0xff]   ;;  %v1577_v16 = vld [vmem:[%s1811_s7 + $0x20] sm:$0xff]  }
  0x5f   :  { %868 = vmatprep.subr.bf16.mxu0 %v1539_v18  ;;  %898 = vmatprep.mubr.bf16.mxu0 %v1634_v32  ;;  %v1579_v18 = vld [vmem:[%s1811_s7 + $0x10] sm:$0xff]  }
  0x60   :  { %1413 = vmatpush3.bf16.msra.mxu1 %v1559_v34  ;;  %v1580_v34 = vld [vmem:[%s1811_s7 + $0x8] sm:$0xff]  }
  0x61   :  { %1414 = vmatprep.subr.bf16.mxu1 %v1560_v35  ;;  %v1581_v35 = vld [vmem:[%s1811_s7] sm:$0xff]  }
  0x62   :  { %869 = vmatpush1.bf16.msra.mxu0 %v1537_v19  ;;  %v776_v19 = vlaneseq }
  0x63   :  { %870 = vmatprep.subr.bf16.mxu0 %v1542_v20 }
  0x64   :  { %1415 = vmatpush3.bf16.msra.mxu1 %v1561_v36  ;;  %v777_v20 = vshrl.u32 %v776_v19, 7 }
  0x65   :  { %1416 = vmatprep.subr.bf16.mxu1 %v1562_v37  ;;  %v1298_v37 = vld [vmem:[%s1810_s6] ss:$0 sm:$0xff] }
  0x66   :  { %871 = vmatpush1.bf16.msra.mxu0 %v1540_v21  ;;  %v778_v21 = vsub.s32 0, %v777_v20 }
  0x67   :  { %872 = vmatprep.subr.bf16.mxu0 %v1545_v22  ;;  %v774_v22 = vld [vmem:[%s1808_s4] sm:$0x3] }
  0x68   :  { %1417 = vmatpush3.bf16.msra.mxu1 %v1563_v38 }
  0x69   :  { %1418 = vmatprep.subr.bf16.mxu1 %v1564_v39 }
  0x6a   :  { %873 = vmatpush1.bf16.msra.mxu0 %v1543_v23  ;;  %v782_v23 = vsub.s32 1, %v777_v20 }
  0x6b   :  { %874 = vmatprep.subr.bf16.mxu0 %v1548_v24  ;;  %v779_v24 = vrot.slane %v774_v22, %v778_v21 }
  0x6c   :  { %1419 = vmatpush3.bf16.msra.mxu1 %v1565_v40 }
  0x6d   :  { %1420 = vmatprep.subr.bf16.mxu1 %v1566_v41 }
  0x6e   :  { %875 = vmatpush1.bf16.msra.mxu0 %v1546_v25  ;;  %v783_v25 = vrot.slane %v774_v22, %v782_v23 }
  0x6f   :  { %876 = vmatprep.subr.bf16.mxu0 %v1551_v26 }
  0x70   :  { %1421 = vmatpush3.bf16.msra.mxu1 %v1567_v42 }
  0x71   :  { %1422 = vmatprep.subr.bf16.mxu1 %v1568_v43 }
  0x72   :  { %877 = vmatpush1.bf16.msra.mxu0 %v1549_v27 }
  0x73   :  { %878 = vmatprep.subr.bf16.mxu0 %v1554_v28 }
  0x74   :  { %1423 = vmatpush3.bf16.msra.mxu1 %v1569_v44  ;;  %v1197_v44 = vand.u32 127, %v776_v19 }
  0x75   :  { %1424 = vmatprep.subr.bf16.mxu1 %v1570_v8 }
  0x76   :  { %879 = vmatpush1.bf16.msra.mxu0 %v1552_v29  ;;  %vm1198_vm1 = vcmp.lt.s32.totalorder %v1197_v44, 10 }
  0x77   :  { %880 = vmatprep.subr.bf16.mxu0 %v1557_v30 }
  0x78   :  { %1425 = vmatpush3.bf16.msra.mxu1 %v1571_v9 }
  0x79   :  { %1426 = vmatprep.subr.bf16.mxu1 %v1572_v10 }
  0x7a   :  { %881 = vmatpush1.bf16.msra.mxu0 %v1555_v31 }
  0x7b   :  { %1443 = vmatprep.subr.bf16.mxu0 %v1635_v13 }
  0x7c   :  { %1427 = vmatpush3.bf16.msra.mxu1 %v1573_v11 }
  0xfd   :  { %v1340_v45 = vpop.f32.mrf.mxu0 }
  0xfe   :  { %v1362_v46 = vpop.f32.mrf.mxu1 }
  0xff   :  { %v1341_v47 = vpop.f32.mrf.mxu0 }
 0x100   :  { %v1363_v48 = vpop.f32.mrf.mxu1  ;;  %v1342_v53 = vadd.f32 %v1341_v47, %v1340_v45  ;;  %v1315_v45 = vld [vmem:[%s1812_s8] ss:$0 sm:$0xff] }
 0x101   :  { %v1343_v49 = vpop.f32.mrf.mxu0  ;;  %v1364_v56 = vadd.f32 %v1363_v48, %v1362_v46 }
 0x102   :  { %v1365_v50 = vpop.f32.mrf.mxu1  ;;  %v631_v55 = vadd.f32 %v1342_v53, %v1217_v54 }
 0x103   :  { %v1344_v51 = vpop.f32.mrf.mxu0 }
 0x104   :  { %v1366_v52 = vpop.f32.mrf.mxu1  ;;  %v671_v60 = vadd.f32 %v1364_v56, %v631_v55 }
 0x11d   :  { %v1384_v57 = vpop.f32.mrf.mxu0 }
 0x11e   :  { %v1406_v58 = vpop.f32.mrf.mxu1 }
 0x11f   :  { %v1385_v59 = vpop.f32.mrf.mxu0 }
 0x120   :  { %v1386_v61 = vadd.f32 %v1385_v59, %v1384_v57  ;;  %v1407_v62 = vpop.f32.mrf.mxu1 }
 0x121   :  { %v1387_v63 = vpop.f32.mrf.mxu0  ;;  %v1408_v1 = vadd.f32 %v1407_v62, %v1406_v58 }
 0x122   :  { %v711_v0 = vadd.f32 %v1386_v61, %v671_v60  ;;  %v1409_v2 = vpop.f32.mrf.mxu1 }
 0x123   :  { %v1388_v3 = vpop.f32.mrf.mxu0 }
 0x124   :  { %v751_v4 = vadd.f32 %v1408_v1, %v711_v0  ;;  %v1410_v5 = vpop.f32.mrf.mxu1 }
 0x126   :  { %v756_v6 = vmax.f32 %v751_v4, 0.0 }
 0x128   :  { %v757_v7 = vpack.c.bf16 %v756_v6, %v756_v6 }
 0x12a   :  { %899 = vmatmul.mubr.bf16.vlgmr.msra.gmra.mxu0 %v757_v7 }
 0x12b   :  { %1444 = vmatpush3.bf16.msra.mxu0 %v1574_v12  ;;  %1459 = vmatprep.mubr.msk.bf16.mxu0 %vm1636_vm0, %v1635_v13 }
 0x12c   :  { %1445 = vmatprep.subr.bf16.mxu0 %v1635_v13 }
 0x12f   :  { %1446 = vmatpush3.bf16.msra.mxu0 %v1575_v14 }
 0x130   :  { %1447 = vmatprep.subr.bf16.mxu0 %v1635_v13 }
 0x133   :  { %1448 = vmatpush3.bf16.msra.mxu0 %v1576_v15 }
 0x134   :  { %1449 = vmatprep.subr.bf16.mxu0 %v1635_v13 }
 0x137   :  { %1450 = vmatpush3.bf16.msra.mxu0 %v1577_v16 }
 0x138   :  { %1451 = vmatprep.subr.bf16.mxu0 %v1635_v13 }
 0x13b   :  { %1452 = vmatpush3.bf16.msra.mxu0 %v1578_v17 }
 0x13c   :  { %1453 = vmatprep.subr.bf16.mxu0 %v1635_v13 }
 0x13f   :  { %1454 = vmatpush3.bf16.msra.mxu0 %v1579_v18 }
 0x140   :  { %1455 = vmatprep.subr.bf16.mxu0 %v1635_v13 }
 0x143   :  { %1456 = vmatpush3.bf16.msra.mxu0 %v1580_v34 }
 0x144   :  { %1457 = vmatprep.subr.bf16.mxu0 %v1635_v13 }
 0x147   :  { %1458 = vmatpush3.bf16.msra.mxu0 %v1581_v35 }
 0x1ea   :  { %v900_v26 = vpop.f32.mrf.mxu0 }
 0x1eb   :  { %v901_v27 = vadd.f32 %v900_v26, %v779_v24 }
 0x1ec   :  { %v902_v28 = vpop.f32.mrf.mxu0 }
 0x1ed   :  { %v903_v29 = vadd.f32 %v902_v28, %v783_v25  ;;  %v907_v32 = vpack.c.bf16 %v901_v27, %v901_v27 }
 0x1ee   :  { %v904_v30 = vpop.f32.mrf.mxu0 }
 0x1ef   :  { %v908_v31 = vpack.c.bf16 %v903_v29, %v903_v29 }
 0x1f0   :  { %v905_v33 = vpop.f32.mrf.mxu0 }
 0x1f1   :  { %1076 = vmatprep.mubr.bf16.mxu1 %v908_v31 }
 0x1f2   :  { %1077 = vmatmul.mubr.bf16.vlgmr.msra.gmra.mxu1 %v907_v32 }
 0x2b2   :  { %v1428_v36 = vpop.f32.mrf.mxu1 }
 0x2b4   :  { %v1429_v38 = vpop.f32.mrf.mxu1 }
 0x2b5   :  { %v1430_v39 = vadd.f32 %v1429_v38, %v1428_v36 }
 0x2b6   :  { %v1431_v40 = vpop.f32.mrf.mxu1 }
 0x2b7   :  { %v1079_v41 = vadd.f32 %v1430_v39, %v1298_v37 }
 0x2b8   :  { %v1432_v42 = vpop.f32.mrf.mxu1 }
 0x2b9   :  { %v1084_v43 = vpack.c.bf16 %v1079_v41, %v1079_v41 }
 0x2bb   :  { %1460 = vmatmul.mubr.bf16.vlgmr.msra.gmra.mxu0 %v1084_v43 }
 0x37b   :  { %v1190_v46 = vpop.f32.mrf.mxu0 }
 0x37c   :  { %v1191_v47 = vadd.f32 %v1315_v45, %v1190_v46 }
 0x37d   :  { %v1461_v48 = vpop.f32.mrf.mxu0 }
 0x37e   :  { %v1199_v49 = vsel %vm1198_vm1, %v1191_v47, -1e+30 }
 0x37f   :  { %1200 = vmax.xlane.f32.xlu0 %v1199_v49  ;;  %v1193_v50 = vpop.f32.mrf.mxu0 }
 0x381   :  { %v1462_v51 = vpop.f32.mrf.mxu0 }
 0x408   :  { %v1201_v52 = vpop.xlane.xlu0 %1200 }
 0x409   :  { %v1202_v53 = vsub.f32 %v1199_v49, %v1201_v52 }
 0x40b   :  { %v1203_v54 = vmul.f32 1.442695, %v1202_v53 }
 0x40d   :  { %1582 = vpow2.f32 %v1203_v54 }
 0x41a   :  { %v1583_v55 = vpop.eup %1582 }
 0x41b   :  { %1205 = vadd.xlane.f32.xlu0 %v1583_v55 }
 0x4a4   :  { %v1206_v56 = vpop.xlane.xlu0 %1205 }
 0x4a5   :  { %1584 = vlog2.f32 %v1206_v56 }
 0x4b2   :  { %v1585_v57 = vpop.eup %1584 }
 0x4b3   :  { %v1208_v58 = vmul.f32 0.6931472, %v1585_v57 }
 0x4b5   :  { %v1209_v59 = vsub.f32 %v1202_v53, %v1208_v58 }
 0x4b7   :  { %1210 = vst [vmem:[%s1813_s9] sm:$0xff] %v1209_v59 }
 0x4b8   :  { %1215 = vsyncpa [#allocation3], 1 }
 0x4b9   :  { %1216 = vsyncpa [#allocation5], 1 }

</bundles_post_ra>
